<compile_context>
chip_gen: v6e
topology: v6e:2x2x1
jax: 0.10.0
libtpu: 0.0.40
codegen_flags: <defaults>
</compile_context>

<pallas_src>
import jax
import jax.numpy as jnp
import numpy as np
from jax.experimental import pallas as pl
from jax.experimental.pallas import tpu as pltpu

H1 = 256
H2 = 128
A_PAD = 128           # lane-dense output width (real Q-values live in [:, :A])
MAX_BATCH_TILE = 512  # rows per grid step at large batch (sweep 256..2048 if needed)


def _round_up(x, m):
    return ((x + m - 1) // m) * m


def _batch_tile(B):
    """Batch tile: minimal padding; >=2 tiles for B>=64 so v7x megacore engages."""
    if B < 64:
        return B  # single tile equal to the full batch dim (full-dim exception)
    n_tiles = max(2, pl.cdiv(B, MAX_BATCH_TILE))
    return _round_up(pl.cdiv(B, n_tiles), 8)


def dqn_mlp_kernel(x_ref, w1_ref, b1_ref, w2_ref, b2_ref, w3_ref, b3_ref, o_ref):
    # Layer 1: bf16 operands on the MXU, f32 accumulation; bias-add / ReLU stay
    # f32 on the VPU (v5e has no bf16 VPU path -- do not "optimize" this away).
    h1 = jnp.dot(x_ref[...], w1_ref[...], preferred_element_type=jnp.float32)
    h1 = jnp.maximum(h1 + b1_ref[...], 0.0)

    # Layer 2: Linear + ReLU.
    h2 = jnp.dot(h1.astype(jnp.bfloat16), w2_ref[...],
                 preferred_element_type=jnp.float32)
    h2 = jnp.maximum(h2 + b2_ref[...], 0.0)

    # Layer 3: Linear (Q-values, no activation); lane-dense 128-wide bf16 store.
    q = jnp.dot(h2.astype(jnp.bfloat16), w3_ref[...],
                preferred_element_type=jnp.float32)
    o_ref[...] = (q + b3_ref[...]).astype(o_ref.dtype)


def prepare_params(params):
    """Cast matmul operands to bf16 and pad the last layer to 128 lanes."""
    w1, b1, w2, b2, w3, b3 = params
    a = w3.shape[1]
    w3p = jnp.zeros((w3.shape[0], A_PAD), jnp.float32).at[:, :a].set(w3)
    b3p = jnp.zeros((1, A_PAD), jnp.float32).at[:, :a].set(b3)
    return (
        w1.astype(jnp.bfloat16), b1.astype(jnp.float32),
        w2.astype(jnp.bfloat16), b2.astype(jnp.float32),
        w3p.astype(jnp.bfloat16), b3p.astype(jnp.float32),
    )


def dqn_forward(x, prepared, n_actions):
    """Fused 3-layer MLP forward. x: [B, D_in] (f32 or bf16) -> [B, n_actions] f32."""
    w1, b1, w2, b2, w3p, b3p = prepared
    B, D_in = x.shape

    if x.dtype != jnp.bfloat16:
        # Hot-path callers should hand over bf16 observations directly so this
        # cast fuses upstream; it halves the kernel's input DMA bytes.
        x = x.astype(jnp.bfloat16)

    tb = _batch_tile(B)
    grid = (pl.cdiv(B, tb),)  # ragged last tile handled by Pallas masking, no jnp.pad copy

    const = lambda shape: pl.BlockSpec(shape, lambda i: (0, 0))  # VMEM-resident weights

    cost = pl.CostEstimate(
        flops=2 * B * (D_in * H1 + H1 * H2 + H2 * A_PAD),
        transcendentals=0,
        bytes_accessed=(B * D_in * 2 + B * A_PAD * 2                      # x + out (bf16)
                        + 2 * (D_in * H1 + H1 * H2 + H2 * A_PAD)          # bf16 weights
                        + 4 * (H1 + H2 + A_PAD)),                         # f32 biases
    )

    out = pl.pallas_call(
        dqn_mlp_kernel,
        out_shape=jax.ShapeDtypeStruct((B, A_PAD), jnp.bfloat16),
        grid=grid,
        in_specs=[
            pl.BlockSpec((tb, D_in), lambda i: (i, 0)),   # x: tiled over batch
            const((D_in, H1)), const((1, H1)),            # layer 1
            const((H1, H2)),   const((1, H2)),            # layer 2
            const((H2, A_PAD)), const((1, A_PAD)),        # layer 3 (lane-padded)
        ],
        out_specs=pl.BlockSpec((tb, A_PAD), lambda i: (i, 0)),
        compiler_params=pltpu.CompilerParams(
            dimension_semantics=("parallel",)),           # shards tiles across v7x's 2 TCs
        cost_estimate=cost,
    )(x, w1, b1, w2, b2, w3p, b3p)

    return out[:, :n_actions].astype(jnp.float32)


def init_params(key, d_in, n_actions):
    """Deterministic PyTorch-style Linear init: U(-1/sqrt(fan_in), +1/sqrt(fan_in))."""
    ks = jax.random.split(key, 6)

    def linear(kw, kb, fan_in, fan_out):
        bound = 1.0 / np.sqrt(fan_in)
        w = jax.random.uniform(kw, (fan_in, fan_out), jnp.float32, -bound, bound)
        b = jax.random.uniform(kb, (1, fan_out), jnp.float32, -bound, bound)
        return w, b

    w1, b1 = linear(ks[0], ks[1], d_in, H1)
    w2, b2 = linear(ks[2], ks[3], H1, H2)
    w3, b3 = linear(ks[4], ks[5], H2, n_actions)
    return (w1, b1, w2, b2, w3, b3)


def reference_forward(x, prepared, n_actions):
    """Plain-JAX reference mirroring the kernel's bf16 matmul / f32 epilogue / bf16 store."""
    w1, b1, w2, b2, w3p, b3p = prepared
    xb = x.astype(jnp.bfloat16)
    h1 = jnp.maximum(jnp.dot(xb, w1, preferred_element_type=jnp.float32) + b1, 0.0)
    h2 = jnp.maximum(jnp.dot(h1.astype(jnp.bfloat16), w2,
                             preferred_element_type=jnp.float32) + b2, 0.0)
    q = jnp.dot(h2.astype(jnp.bfloat16), w3p, preferred_element_type=jnp.float32) + b3p
    return q.astype(jnp.bfloat16)[:, :n_actions].astype(jnp.float32)


if __name__ == "__main__":
    key = jax.random.PRNGKey(0)
    k_param, k_x = jax.random.split(key)

    batch = 8
    input_shape = 32      # DQN(input_shape=32, ...)
    output_actions = 4    # DQN(..., output_actions=4)

    params = init_params(k_param, input_shape, output_actions)
    prepared = prepare_params(params)
    x = jax.random.normal(k_x, (batch, input_shape), jnp.float32)

    out = dqn_forward(x, prepared, output_actions)
    out = jax.block_until_ready(out)

    # Reference check (bf16-operand math mirrored exactly).
    ref = reference_forward(x, prepared, output_actions)
    np.testing.assert_allclose(np.asarray(out), np.asarray(ref),
                               rtol=2e-2, atol=2e-2)

    # Sanity check against the full-f32 PyTorch-equivalent forward.
    w1, b1, w2, b2, w3, b3 = params
    ref_f32 = jnp.maximum(x @ w1 + b1, 0.0)
    ref_f32 = jnp.maximum(ref_f32 @ w2 + b2, 0.0)
    ref_f32 = ref_f32 @ w3 + b3
    np.testing.assert_allclose(np.asarray(out), np.asarray(ref_f32),
                               rtol=5e-2, atol=5e-2)

    assert out.shape == (batch, output_actions)

    # Awkward (non-multiple-of-8) batch: single full-dim tile, no padding copy.
    x2 = jax.random.normal(k_x, (20, input_shape), jnp.float32)
    out2 = jax.block_until_ready(dqn_forward(x2, prepared, output_actions))
    np.testing.assert_allclose(np.asarray(out2),
                               np.asarray(reference_forward(x2, prepared, output_actions)),
                               rtol=2e-2, atol=2e-2)

    print("KERNEL_OK")
</pallas_src>

<mosaic_0001>
module attributes {stable_mosaic.version = 11 : i64} {
  func.func @dqn_mlp_kernel(%arg0: i32, %arg1: memref<8x32xbf16, #tpu.memory_space<vmem>>, %arg2: memref<32x256xbf16, #tpu.memory_space<vmem>>, %arg3: memref<1x256xf32, #tpu.memory_space<vmem>>, %arg4: memref<256x128xbf16, #tpu.memory_space<vmem>>, %arg5: memref<1x128xf32, #tpu.memory_space<vmem>>, %arg6: memref<128x128xbf16, #tpu.memory_space<vmem>>, %arg7: memref<1x128xf32, #tpu.memory_space<vmem>>, %arg8: memref<8x128xbf16, #tpu.memory_space<vmem>>) attributes {dimension_semantics = [#tpu.dimension_semantics<parallel>], iteration_bounds = array<i64: 1>, scalar_prefetch = 0 : i64, scratch_operands = 0 : i64, tpu.core_type = #tpu.core_type<tc>, window_params = [{transform_indices = @transform_0, window_bounds = array<i64: 8, 32>}, {pipeline_mode = #tpu.pipeline_mode<synchronous>, transform_indices = @transform_1, window_bounds = array<i64: 32, 256>}, {pipeline_mode = #tpu.pipeline_mode<synchronous>, transform_indices = @transform_2, window_bounds = array<i64: 1, 256>}, {pipeline_mode = #tpu.pipeline_mode<synchronous>, transform_indices = @transform_3, window_bounds = array<i64: 256, 128>}, {pipeline_mode = #tpu.pipeline_mode<synchronous>, transform_indices = @transform_4, window_bounds = array<i64: 1, 128>}, {pipeline_mode = #tpu.pipeline_mode<synchronous>, transform_indices = @transform_5, window_bounds = array<i64: 128, 128>}, {pipeline_mode = #tpu.pipeline_mode<synchronous>, transform_indices = @transform_6, window_bounds = array<i64: 1, 128>}, {transform_indices = @transform_7, window_bounds = array<i64: 8, 128>}]} {
    %c0 = arith.constant 0 : index
    %c0_0 = arith.constant 0 : index
    %0 = vector.load %arg1[%c0, %c0_0] : memref<8x32xbf16, #tpu.memory_space<vmem>>, vector<8x32xbf16>
    %c0_1 = arith.constant 0 : index
    %c0_2 = arith.constant 0 : index
    %1 = vector.load %arg2[%c0_1, %c0_2] : memref<32x256xbf16, #tpu.memory_space<vmem>>, vector<32x256xbf16>
    %cst = arith.constant dense<0.000000e+00> : vector<8x256xf32>
    %2 = tpu.matmul %0, %1, %cst {dimension_numbers = #tpu.dot_dimension_numbers<[1], [0], [0], [1], [0, 0, 1, 1], [], []>} : vector<8x32xbf16>, vector<32x256xbf16>, vector<8x256xf32> -> vector<8x256xf32>
    %c0_3 = arith.constant 0 : index
    %c0_4 = arith.constant 0 : index
    %3 = vector.load %arg3[%c0_3, %c0_4] : memref<1x256xf32, #tpu.memory_space<vmem>>, vector<1x256xf32>
    %4 = vector.broadcast %3 : vector<1x256xf32> to vector<8x256xf32>
    %5 = arith.addf %2, %4 : vector<8x256xf32>
    %cst_5 = arith.constant 0.000000e+00 : f32
    %6 = vector.broadcast %cst_5 : f32 to vector<8x256xf32>
    %7 = arith.maximumf %5, %6 : vector<8x256xf32>
    %8 = arith.truncf %7 : vector<8x256xf32> to vector<8x256xbf16>
    %c0_6 = arith.constant 0 : index
    %c0_7 = arith.constant 0 : index
    %9 = vector.load %arg4[%c0_6, %c0_7] : memref<256x128xbf16, #tpu.memory_space<vmem>>, vector<256x128xbf16>
    %cst_8 = arith.constant dense<0.000000e+00> : vector<8x128xf32>
    %10 = tpu.matmul %8, %9, %cst_8 {dimension_numbers = #tpu.dot_dimension_numbers<[1], [0], [0], [1], [0, 0, 1, 1], [], []>} : vector<8x256xbf16>, vector<256x128xbf16>, vector<8x128xf32> -> vector<8x128xf32>
    %c0_9 = arith.constant 0 : index
    %c0_10 = arith.constant 0 : index
    %11 = vector.load %arg5[%c0_9, %c0_10] : memref<1x128xf32, #tpu.memory_space<vmem>>, vector<1x128xf32>
    %12 = vector.broadcast %11 : vector<1x128xf32> to vector<8x128xf32>
    %13 = arith.addf %10, %12 : vector<8x128xf32>
    %cst_11 = arith.constant 0.000000e+00 : f32
    %14 = vector.broadcast %cst_11 : f32 to vector<8x128xf32>
    %15 = arith.maximumf %13, %14 : vector<8x128xf32>
    %16 = arith.truncf %15 : vector<8x128xf32> to vector<8x128xbf16>
    %c0_12 = arith.constant 0 : index
    %c0_13 = arith.constant 0 : index
    %17 = vector.load %arg6[%c0_12, %c0_13] : memref<128x128xbf16, #tpu.memory_space<vmem>>, vector<128x128xbf16>
    %cst_14 = arith.constant dense<0.000000e+00> : vector<8x128xf32>
    %18 = tpu.matmul %16, %17, %cst_14 {dimension_numbers = #tpu.dot_dimension_numbers<[1], [0], [0], [1], [0, 0, 1, 1], [], []>} : vector<8x128xbf16>, vector<128x128xbf16>, vector<8x128xf32> -> vector<8x128xf32>
    %c0_15 = arith.constant 0 : index
    %c0_16 = arith.constant 0 : index
    %19 = vector.load %arg7[%c0_15, %c0_16] : memref<1x128xf32, #tpu.memory_space<vmem>>, vector<1x128xf32>
    %20 = vector.broadcast %19 : vector<1x128xf32> to vector<8x128xf32>
    %21 = arith.addf %18, %20 : vector<8x128xf32>
    %22 = arith.truncf %21 : vector<8x128xf32> to vector<8x128xbf16>
    %c0_17 = arith.constant 0 : index
    %c0_18 = arith.constant 0 : index
    %23 = vector.load %arg8[%c0_17, %c0_18] : memref<8x128xbf16, #tpu.memory_space<vmem>>, vector<8x128xbf16>
    tpu.vector_store %arg8[%c0_17, %c0_18], %22 {strides = array<i32>} : memref<8x128xbf16, #tpu.memory_space<vmem>>, vector<8x128xbf16>,
    return
  }
  func.func @transform_0(%arg0: i32) -> (i32, i32) {
    %c0_i32 = arith.constant 0 : i32
    %c0_i32_0 = arith.constant 0 : i32
    return %arg0, %c0_i32 : i32, i32
  }
  func.func @transform_1(%arg0: i32) -> (i32, i32) {
    %c0_i32 = arith.constant 0 : i32
    %c0_i32_0 = arith.constant 0 : i32
    %c0_i32_1 = arith.constant 0 : i32
    return %c0_i32, %c0_i32_0 : i32, i32
  }
  func.func @transform_2(%arg0: i32) -> (i32, i32) {
    %c0_i32 = arith.constant 0 : i32
    %c0_i32_0 = arith.constant 0 : i32
    %c0_i32_1 = arith.constant 0 : i32
    return %c0_i32, %c0_i32_0 : i32, i32
  }
  func.func @transform_3(%arg0: i32) -> (i32, i32) {
    %c0_i32 = arith.constant 0 : i32
    %c0_i32_0 = arith.constant 0 : i32
    %c0_i32_1 = arith.constant 0 : i32
    return %c0_i32, %c0_i32_0 : i32, i32
  }
  func.func @transform_4(%arg0: i32) -> (i32, i32) {
    %c0_i32 = arith.constant 0 : i32
    %c0_i32_0 = arith.constant 0 : i32
    %c0_i32_1 = arith.constant 0 : i32
    return %c0_i32, %c0_i32_0 : i32, i32
  }
  func.func @transform_5(%arg0: i32) -> (i32, i32) {
    %c0_i32 = arith.constant 0 : i32
    %c0_i32_0 = arith.constant 0 : i32
    %c0_i32_1 = arith.constant 0 : i32
    return %c0_i32, %c0_i32_0 : i32, i32
  }
  func.func @transform_6(%arg0: i32) -> (i32, i32) {
    %c0_i32 = arith.constant 0 : i32
    %c0_i32_0 = arith.constant 0 : i32
    %c0_i32_1 = arith.constant 0 : i32
    return %c0_i32, %c0_i32_0 : i32, i32
  }
  func.func @transform_7(%arg0: i32) -> (i32, i32) {
    %c0_i32 = arith.constant 0 : i32
    %c0_i32_0 = arith.constant 0 : i32
    return %arg0, %c0_i32 : i32, i32
  }
}

</mosaic_0001>

<bundles_post_ra>
// kernel: tpu_custom_call.1
= control target key start
LH: loop header
LB: loop body
LE: loop exit
PB: predicated region body
PF: predicated region fallthrough
CT: control target
= control target key end

     0   :  { %12 = vsyncpa [#allocation3], 0  ;;  %s782_s0 = inlined_call_operand.hbm [shape: bf16[8,32], index: 0, kind: input, shape index: {}]   ;;  %s783_s1 = inlined_call_operand.hbm [shape: bf16[32,256], index: 1, kind: input, shape index: {}]   ;;  %s784_s2 = inlined_call_operand.vmem [shape: f32[1,256], index: 2, kind: input, shape index: {}]   ;;  %s785_s3 = inlined_call_operand.hbm [shape: bf16[256,128], index: 3, kind: input, shape index: {}]   ;;  %s786_s4 = inlined_call_operand.vmem [shape: f32[1,128], index: 4, kind: input, shape index: {}]   ;;  %s787_s5 = inlined_call_operand.hbm [shape: bf16[128,128], index: 5, kind: input, shape index: {}]   ;;  %s788_s6 = inlined_call_operand.vmem [shape: f32[1,128], index: 6, kind: input, shape index: {}]   ;;  %s789_s7 = inlined_call_operand.hbm [shape: bf16[8,128], index: 7, kind: output, shape index: {}]  }
   0x1   :  { %13 = vsyncpa [#allocation6], 0 }
   0x2   :  { %14 = vsyncpa [#allocation9], 0 }
   0x3   :  { %15 = vsyncpa [#allocation4], 0  ;;  %s706_s24 = smov [#allocation5]  }
   0x4   :  { %s31_s25 = sshll.u32 %s706_s24, 4  ;;  %s32_s25 = int_to_ptr.vmem [resolvable:$true] %s31_s25 }
   0x5   :  { %s606_s26 = scalar_lea.vmem %s32_s25, 512  ;;  %p611_p1 = scmp.lt.s32.totalorder %s32_s25, %s32_s25 }
   0x6   :  { %p607_p0 = scmp.ne.s32.totalorder %s32_s25, %s606_s26  ;;  %p612_p2 = scmp.lt.s32.totalorder %s606_s26, %s606_s26 }
   0x8   :  { %p613_p3 = por %p612_p2, %p611_p1 }
   0xa   :  { %p614_p4 = pnand %p613_p3, %p607_p0 }
   0xc   :  { %617 = shalt.err (!%p614_p4)
}
   0xd   :  { %s707_s27 = smov 128   ;;  %s708_s28 = smov 8  }
   0xe   :  { %37 = dma.hbm_to_vmem [thread:$0]  %s783_s1, 512, %s32_s25, [#allocation6], %s707_s27, %s707_s27, %s708_s28  }
   0xf   :  { %s709_s8 = smov [#allocation2]   ;;  %s710_s10 = smov [#allocation7]  }
  0x10   :  { %s22_s9 = sshll.u32 %s709_s8, 4  ;;  %s45_s11 = sshll.u32 %s710_s10, 4  ;;  %s23_s9 = int_to_ptr.vmem [resolvable:$true] %s22_s9  ;;  %s46_s11 = int_to_ptr.vmem [resolvable:$true] %s45_s11 }
  0x11   :  { %s626_s12 = scalar_lea.vmem %s23_s9, 64  ;;  %p631_p6 = scmp.lt.s32.totalorder %s23_s9, %s23_s9 }
  0x12   :  { %p627_p5 = scmp.ne.s32.totalorder %s23_s9, %s626_s12  ;;  %p632_p7 = scmp.lt.s32.totalorder %s626_s12, %s626_s12 }
  0x14   :  { %p633_p8 = por %p632_p7, %p631_p6 }
  0x16   :  { %p634_p9 = pnand %p633_p8, %p627_p5 }
  0x18   :  { %637 = shalt.err (!%p634_p9)
}
  0x19   :  { %25 = dma.hbm_to_vmem [thread:$0]  %s782_s0, 64, %s23_s9, [#allocation3]  }
  0x1a   :  { %s646_s15 = scalar_lea.vmem %s46_s11, 2048  ;;  %p651_p11 = scmp.lt.s32.totalorder %s46_s11, %s46_s11 }
  0x1b   :  { %p647_p10 = scmp.ne.s32.totalorder %s46_s11, %s646_s15  ;;  %p652_p12 = scmp.lt.s32.totalorder %s646_s15, %s646_s15 }
  0x1d   :  { %p653_p13 = por %p652_p12, %p651_p11 }
  0x1f   :  { %p654_p0 = pnand %p653_p13, %p647_p10 }
  0x21   :  { %657 = shalt.err (!%p654_p0)
}
  0x22   :  { %s711_s1 = smov 64   ;;  %s712_s16 = smov 4  }
  0x23   :  { %51 = dma.hbm_to_vmem [thread:$0]  %s785_s3, 2048, %s46_s11, [#allocation6], %s711_s1, %s711_s1, %s712_s16  }
  0x24   :  { %s713_s19 = smov [#allocation8]  }
  0x25   :  { %s59_s20 = sshll.u32 %s713_s19, 4  ;;  %s60_s20 = int_to_ptr.vmem [resolvable:$true] %s59_s20 }
  0x26   :  { %s666_s21 = scalar_lea.vmem %s60_s20, 1024  ;;  %p671_p2 = scmp.lt.s32.totalorder %s60_s20, %s60_s20 }
  0x27   :  { %p667_p1 = scmp.ne.s32.totalorder %s60_s20, %s666_s21  ;;  %p672_p3 = scmp.lt.s32.totalorder %s666_s21, %s666_s21 }
  0x29   :  { %p673_p4 = por %p672_p3, %p671_p2 }
  0x2b   :  { %p674_p5 = pnand %p673_p4, %p667_p1 }
  0x2d   :  { %677 = shalt.err (!%p674_p5)
}
  0x2e   :  { %65 = dma.hbm_to_vmem [thread:$0]  %s787_s5, 1024, %s60_s20, [#allocation9], %s711_s1, %s711_s1, %s712_s16  }
  0x2f   :  { %698 = dma.done.wait [#allocation3], 64  }
  0x30   :  { %699 = vsyncadd [#allocation3], 4294967232 }
  0x31   :  { %700 = dma.done.wait [#allocation6], 2560  }
  0x32   :  { %701 = vsyncadd [#allocation6], 4294964736 }
  0x33   :  { %702 = dma.done.wait [#allocation9], 1024  }
  0x34   :  { %703 = vsyncadd [#allocation9], 4294966272  ;;  %v714_v0 = vmov 0   ;;  %v568_v1 = vld [vmem:[#allocation5 + $0x14] ss:$8 sps:$4 sm:$0xff]   ;;  %vm118_vm0 = vcmask 261120   ;;  %v88_v28 = vlaneseq }
  0x35   :  { %154 = vmatprep.mubr.bf16.mxu0 %v714_v0  ;;  %v570_v2 = vld [vmem:[#allocation5 + $0x10] ss:$8 sps:$4 sm:$0xff]   ;;  %134 = vmatprep.subr.bf16.mxu0 %v568_v1  ;;  %v571_v3 = vld [vmem:[#allocation5 + $0x4] ss:$8 sps:$4 sm:$0xff]   ;;  %v573_v4 = vld [vmem:[#allocation5] ss:$8 sps:$4 sm:$0xff]  }
  0x36   :  { %135 = vmatpush1.bf16.msra.mxu0 %v570_v2  ;;  %v574_v5 = vld [vmem:[#allocation7 + $0x78] sm:$0xff]   ;;  %v576_v8 = vld [vmem:[#allocation7 + $0x70] sm:$0xff]   ;;  %v578_v10 = vld [vmem:[#allocation7 + $0x68] sm:$0xff]   ;;  %v715_v23 = vmov 0.0   ;;  %v89_v29 = vshrl.u32 %v88_v28, 7  ;;  %vm716_vm1 = vmmov 0  }
  0x37   :  { %136 = vmatprep.subr.bf16.mxu0 %v571_v3  ;;  %v575_v6 = vld [vmem:[#allocation7 + $0x38] sm:$0xff]   ;;  %505 = vmatprep.subr.bf16.mxu1 %v574_v5  ;;  %v577_v9 = vld [vmem:[#allocation7 + $0x30] sm:$0xff]   ;;  %v579_v11 = vld [vmem:[#allocation7 + $0x28] sm:$0xff]   ;;  %s717_s26 = smov [#allocation10]  }
  0x38   :  { %v81_v7 = vld [vmem:[#allocation2] sm:$0xf]  ;;  %506 = vmatpush3.bf16.msra.mxu1 %v575_v6  ;;  %v580_v12 = vld [vmem:[#allocation7 + $0x60] sm:$0xff]   ;;  %v584_v16 = vld [vmem:[#allocation7 + $0x50] sm:$0xff]   ;;  %v90_v30 = vsub.s32 0, %v89_v29  ;;  %v94_v32 = vsub.s32 1, %v89_v29 }
  0x39   :  { %507 = vmatprep.subr.bf16.mxu1 %v576_v8  ;;  %v581_v13 = vld [vmem:[#allocation7 + $0x20] sm:$0xff]   ;;  %v582_v14 = vld [vmem:[#allocation7 + $0x58] sm:$0xff]   ;;  %v585_v17 = vld [vmem:[#allocation7 + $0x10] sm:$0xff]   ;;  %s463_s27 = sshll.u32 %s717_s26, 4  ;;  %s464_s27 = int_to_ptr.vmem [resolvable:$true] %s463_s27 }
  0x3a   :  { %137 = vmatpush1.bf16.msra.mxu0 %v573_v4  ;;  %v583_v15 = vld [vmem:[#allocation7 + $0x18] sm:$0xff]   ;;  %v586_v18 = vld [vmem:[#allocation7 + $0x48] sm:$0xff]   ;;  %v588_v20 = vld [vmem:[#allocation7 + $0x40] sm:$0xff]   ;;  %p683_p7 = scmp.lt.s32.totalorder %s464_s27, %s464_s27 }
  0x3b   :  { %v587_v19 = vld [vmem:[#allocation7 + $0x8] sm:$0xff]   ;;  %v589_v21 = vld [vmem:[#allocation7] sm:$0xff]   ;;  %v590_v22 = vld [vmem:[#allocation8 + $0x38] sm:$0xff]   ;;  %536 = vmatprep.subr.bf16.mxu0 %v715_v23 }
  0x3c   :  { %508 = vmatpush3.bf16.msra.mxu1 %v577_v9  ;;  %v591_v24 = vld [vmem:[#allocation8 + $0x30] sm:$0xff]   ;;  %v592_v25 = vld [vmem:[#allocation8 + $0x28] sm:$0xff]   ;;  %v593_v26 = vld [vmem:[#allocation8 + $0x20] sm:$0xff]  }
  0x3d   :  { %478 = vmatmul.mubr.msk.bf16.vlgmr.msra.gmra.mxu0 %vm118_vm0, %v81_v7  ;;  %509 = vmatprep.subr.bf16.mxu1 %v578_v10  ;;  %v594_v27 = vld [vmem:[#allocation8 + $0x18] sm:$0xff]   ;;  %v595_v45 = vld [vmem:[#allocation8 + $0x10] sm:$0xff]   ;;  %v596_v46 = vld [vmem:[#allocation8 + $0x8] sm:$0xff]  }
  0x3e   :  { %537 = vmatpush3.bf16.msra.mxu0 %v590_v22  ;;  %v86_v31 = vld [vmem:[%s784_s2] sm:$0x3]  ;;  %v597_v47 = vld [vmem:[#allocation8] sm:$0xff]   ;;  %552 = vmatprep.mubr.msk.bf16.mxu0 %vm716_vm1, %v715_v23 }
  0x3f   :  { %538 = vmatprep.subr.bf16.mxu0 %v715_v23  ;;  %v91_v33 = vrot.slane %v86_v31, %v90_v30  ;;  %v95_v34 = vrot.slane %v86_v31, %v94_v32  ;;  %v479_v49 = vld [vmem:[%s786_s4] ss:$0 sm:$0xff]  ;;  %s678_s4 = scalar_lea.vmem %s464_s27, 64 }
  0x40   :  { %510 = vmatpush3.bf16.msra.mxu1 %v579_v11  ;;  %v496_v57 = vld [vmem:[%s788_s6] ss:$0 sm:$0xff]  ;;  %p679_p6 = scmp.ne.s32.totalorder %s464_s27, %s678_s4  ;;  %p684_p8 = scmp.lt.s32.totalorder %s678_s4, %s678_s4 }
  0x41   :  { %511 = vmatprep.subr.bf16.mxu1 %v580_v12 }
  0x42   :  { %539 = vmatpush3.bf16.msra.mxu0 %v591_v24  ;;  %p685_p9 = por %p684_p8, %p683_p7 }
  0x43   :  { %540 = vmatprep.subr.bf16.mxu0 %v715_v23 }
  0x44   :  { %512 = vmatpush3.bf16.msra.mxu1 %v581_v13  ;;  %p686_p10 = pnand %p685_p9, %p679_p6 }
  0x45   :  { %513 = vmatprep.subr.bf16.mxu1 %v582_v14 }
  0x46   :  { %541 = vmatpush3.bf16.msra.mxu0 %v592_v25 }
  0x47   :  { %542 = vmatprep.subr.bf16.mxu0 %v715_v23 }
  0x48   :  { %514 = vmatpush3.bf16.msra.mxu1 %v583_v15 }
  0x49   :  { %515 = vmatprep.subr.bf16.mxu1 %v584_v16 }
  0x4a   :  { %543 = vmatpush3.bf16.msra.mxu0 %v593_v26 }
  0x4b   :  { %544 = vmatprep.subr.bf16.mxu0 %v715_v23 }
  0x4c   :  { %516 = vmatpush3.bf16.msra.mxu1 %v585_v17 }
  0x4d   :  { %517 = vmatprep.subr.bf16.mxu1 %v586_v18 }
  0x4e   :  { %545 = vmatpush3.bf16.msra.mxu0 %v594_v27 }
  0x4f   :  { %546 = vmatprep.subr.bf16.mxu0 %v715_v23 }
  0x50   :  { %518 = vmatpush3.bf16.msra.mxu1 %v587_v19 }
  0x51   :  { %519 = vmatprep.subr.bf16.mxu1 %v588_v20 }
  0x52   :  { %547 = vmatpush3.bf16.msra.mxu0 %v595_v45 }
  0x53   :  { %548 = vmatprep.subr.bf16.mxu0 %v715_v23 }
  0x54   :  { %520 = vmatpush3.bf16.msra.mxu1 %v589_v21 }
  0x56   :  { %549 = vmatpush3.bf16.msra.mxu0 %v596_v46 }
  0x57   :  { %550 = vmatprep.subr.bf16.mxu0 %v715_v23 }
  0x5a   :  { %551 = vmatpush3.bf16.msra.mxu0 %v597_v47 }
  0xfd   :  { %v156_v35 = vpop.f32.mrf.mxu0 }
  0xfe   :  { %v157_v36 = vadd.f32 %v156_v35, %v91_v33 }
  0xff   :  { %v158_v37 = vpop.f32.mrf.mxu0 }
 0x100   :  { %v159_v38 = vadd.f32 %v158_v37, %v95_v34  ;;  %v163_v39 = vmax.f32 %v157_v36, 0.0 }
 0x101   :  { %v160_v40 = vpop.f32.mrf.mxu0 }
 0x102   :  { %v164_v41 = vmax.f32 %v159_v38, 0.0  ;;  %v165_v44 = vpack.c.bf16 %v163_v39, %v163_v39 }
 0x103   :  { %v161_v42 = vpop.f32.mrf.mxu0 }
 0x104   :  { %v166_v43 = vpack.c.bf16 %v164_v41, %v164_v41 }
 0x106   :  { %334 = vmatprep.mubr.bf16.mxu1 %v166_v43 }
 0x107   :  { %335 = vmatmul.mubr.bf16.vlgmr.msra.gmra.mxu1 %v165_v44 }
 0x1c7   :  { %v521_v48 = vpop.f32.mrf.mxu1 }
 0x1c9   :  { %v522_v50 = vpop.f32.mrf.mxu1 }
 0x1ca   :  { %v523_v51 = vadd.f32 %v522_v50, %v521_v48 }
 0x1cb   :  { %v524_v52 = vpop.f32.mrf.mxu1 }
 0x1cc   :  { %v337_v53 = vadd.f32 %v523_v51, %v479_v49 }
 0x1cd   :  { %v525_v54 = vpop.f32.mrf.mxu1 }
 0x1ce   :  { %v342_v55 = vmax.f32 %v337_v53, 0.0 }
 0x1d0   :  { %v343_v56 = vpack.c.bf16 %v342_v55, %v342_v55 }
 0x1d2   :  { %553 = vmatmul.mubr.bf16.vlgmr.msra.gmra.mxu0 %v343_v56 }
 0x292   :  { %v449_v58 = vpop.f32.mrf.mxu0 }
 0x293   :  { %v450_v59 = vadd.f32 %v496_v57, %v449_v58 }
 0x294   :  { %v554_v60 = vpop.f32.mrf.mxu0 }
 0x295   :  { %v455_v61 = vpack.c.bf16 %v450_v59, %v450_v59 }
 0x296   :  { %v452_v62 = vpop.f32.mrf.mxu0 }
 0x297   :  { %456 = vst [vmem:[#allocation10] sm:$0xf] %v455_v61 }
 0x298   :  { %v555_v63 = vpop.f32.mrf.mxu0 }
 0x299   :  { %689 = shalt.err (!%p686_p10)
}
 0x29a   :  { %466 = dma.vmem_to_hbm [thread:$0]  %s464_s27, 64, %s789_s7, [#allocation4]  }
 0x29b   :  { %704 = dma.done.wait [#allocation4], 64  }
 0x29c   :  { %705 = vsyncadd [#allocation4], 4294967232 }
 0x29d   :  { %470 = vsyncpa [#allocation3], 1 }
 0x29e   :  { %471 = vsyncpa [#allocation6], 1 }
 0x29f   :  { %472 = vsyncpa [#allocation9], 1 }
 0x2a0   :  { %473 = vsyncpa [#allocation4], 1 }

</bundles_post_ra>
